<compile_context>
chip_gen: v6e
topology: v6e:2x2x1
jax: 0.10.0
libtpu: 0.0.40
codegen_flags: <defaults>
</compile_context>

<pallas_src>
import functools

import jax
import jax.numpy as jnp
from jax import lax
from jax.experimental import pallas as pl
from jax.experimental.pallas import tpu as pltpu


def _cdiv(a, b):
    return -(-a // b)


def _round_up(x, m):
    return _cdiv(x, m) * m


def _sublane(dtype):
    # sublane packing granularity: 8 rows (32-bit), 16 (16-bit), 32 (8-bit)
    return max(8, 32 // jnp.dtype(dtype).itemsize)


# ----------------------------------------------------------------------------
# kernel: tiled row-mean (rows = N*C, cols = H*W) with lane-dense accumulator
# ----------------------------------------------------------------------------
def _gap_kernel(x_ref, o_ref, acc_ref, *, inv_hw, hw, block_hw, ragged,
                unroll_limit=16):
    # x_ref:   (tr, block_hw) block of the (N*C, H*W) matrix
    # o_ref:   (tr, 1) per-row mean
    # acc_ref: (tr, 128) f32 lane-dense running sum across the H*W grid axis
    k = pl.program_id(1)
    n_k = pl.num_programs(1)

    @pl.when(k == 0)
    def _init():
        acc_ref[...] = jnp.zeros_like(acc_ref)

    n_full = block_hw // 128          # full 128-lane chunks per block
    tail = block_hw - n_full * 128    # sub-128 tail (only when block_hw == hw)

    def add_chunk(start, masked):
        # 'start' is a lane offset (multiple of 128) within the block.
        chunk = x_ref[:, pl.ds(start, 128)].astype(jnp.float32)
        if masked:
            lane = lax.broadcasted_iota(jnp.int32, acc_ref.shape, 1)
            chunk = jnp.where(start + lane < hw - k * block_hw, chunk, 0.0)
        acc_ref[...] += chunk          # plain lane-aligned VPU add

    def accumulate(masked):
        if n_full <= unroll_limit:
            for j in range(n_full):                     # static unroll
                add_chunk(j * 128, masked)
        elif n_full > 0:
            def body(j, carry):
                add_chunk(pl.multiple_of(j * 128, 128), masked)
                return carry
            lax.fori_loop(0, n_full, body, 0)
        if tail:
            # lane-aligned partial-width VPU add; no per-step cross-lane work
            acc_ref[:, :tail] += (
                x_ref[:, n_full * 128:block_hw].astype(jnp.float32))

    if ragged:
        # Only the last H*W block can contain out-of-range (padding) columns;
        # mask there only so the common path stays mask-free.
        @pl.when(k < n_k - 1)
        def _bulk():
            accumulate(False)

        @pl.when(k == n_k - 1)
        def _edge():
            accumulate(True)
    else:
        accumulate(False)

    @pl.when(k == n_k - 1)
    def _finalize():
        # single cross-lane (XLU) reduce per row block, then scale once
        row_sum = jnp.sum(acc_ref[...], axis=1, keepdims=True)
        o_ref[...] = (row_sum * inv_hw).astype(o_ref.dtype)


# ----------------------------------------------------------------------------
# chip-aware VMEM budgets
# ----------------------------------------------------------------------------
def _vmem_capacity_bytes():
    try:
        return int(pltpu.get_tpu_info().vmem_capacity_bytes)
    except Exception:
        return 128 * 1024 * 1024                    # v5e / v6e default


def _chip_budgets():
    cap = _vmem_capacity_bytes()
    if cap <= 80 * 1024 * 1024:                     # v7x-class: 64 MiB per TC
        return 20 * 1024 * 1024, 40 * 1024 * 1024   # block budget, vmem limit
    return 32 * 1024 * 1024, 64 * 1024 * 1024       # v5e / v6e: 128 MiB VMEM


# ----------------------------------------------------------------------------
# tile selection (byte-budget driven; never exceeds the declared budget)
# ----------------------------------------------------------------------------
def _pick_tiles(rows, hw, dtype, block_budget):
    itemsize = jnp.dtype(dtype).itemsize
    sub = _sublane(dtype)
    padded_hw = _round_up(hw, 128)                  # VMEM lane padding of block
    # per-row VMEM cost: double-buffered input row + (.,128) f32 accumulator
    # row + double-buffered lane-padded (.,1) output row.
    fixed_per_row = 128 * 4 + 2 * 128 * itemsize
    full_per_row = padded_hw * itemsize * 2 + fixed_per_row

    if sub * full_per_row <= block_budget:
        # Full H*W extent per block; rows-per-block from the byte budget.
        th, ragged = hw, False
        tr = block_budget // full_per_row
        # keep >=2 (ideally >=4) row blocks so the "parallel" axis feeds both
        # v7x TensorCores and the pipeline has more than one step.
        if rows >= 8 * sub:
            min_blocks = 4
        elif rows >= 2 * sub:
            min_blocks = 2
        else:
            min_blocks = 1
        tr = min(tr, _cdiv(rows, min_blocks))
        if tr >= rows:
            tr = rows                               # full-extent block (legal)
        else:
            tr = max(sub, (tr // sub) * sub)        # sublane-pack multiple
    else:
        # H*W too large for a single block at the minimum row tile: tile the
        # reduction axis in 128-lane multiples (ragged tail masked in-kernel
        # on the final grid step only).
        tr = sub if rows > sub else rows
        avail = block_budget // tr - fixed_per_row
        th = max(128, (avail // (itemsize * 2)) // 128 * 128)
        th = min(th, padded_hw)
        ragged = (hw % th) != 0
    return tr, th, ragged


# ----------------------------------------------------------------------------
# cached pallas_call builder
# ----------------------------------------------------------------------------
@functools.lru_cache(maxsize=None)
def _gap_fn(rows, hw, dtype_name, block_budget_override=None):
    dtype = jnp.dtype(dtype_name)
    block_budget, vmem_limit = _chip_budgets()
    if block_budget_override is not None:
        block_budget = int(block_budget_override)
    tr, th, ragged = _pick_tiles(rows, hw, dtype, block_budget)
    grid = (_cdiv(rows, tr), _cdiv(hw, th))

    kernel = functools.partial(_gap_kernel, inv_hw=1.0 / float(hw), hw=hw,
                               block_hw=th, ragged=ragged)
    call = pl.pallas_call(
        kernel,
        out_shape=jax.ShapeDtypeStruct((rows, 1), dtype),
        grid_spec=pltpu.PrefetchScalarGridSpec(
            num_scalar_prefetch=0,
            grid=grid,
            in_specs=[pl.BlockSpec((tr, th), lambda i, k: (i, k))],
            out_specs=pl.BlockSpec((tr, 1), lambda i, k: (i, 0)),
            scratch_shapes=[pltpu.VMEM((tr, 128), jnp.float32)]),
        compiler_params=pltpu.CompilerParams(
            # row tiles are independent -> shard across v7x's 2 TensorCores;
            # H*W axis carries the accumulator -> arbitrary (sequential).
            dimension_semantics=("parallel", "arbitrary"),
            vmem_limit_bytes=vmem_limit),
        cost_estimate=pl.CostEstimate(
            flops=rows * hw,
            transcendentals=0,
            bytes_accessed=rows * hw * dtype.itemsize + rows * dtype.itemsize),
    )
    return jax.jit(call)


# ----------------------------------------------------------------------------
# module forward
# ----------------------------------------------------------------------------
def global_avg_pool2d(x, block_budget_bytes=None):
    """AdaptiveAvgPool2d(1) on an NCHW tensor via one Pallas kernel -> (N, C)."""
    n, c, h, w = x.shape
    rows, hw = n * c, h * w
    x2 = x.reshape(rows, hw)                      # free: NCHW is row-major
    out = _gap_fn(rows, hw, x.dtype.name, block_budget_bytes)(x2)   # (rows, 1)
    return out.reshape(n, c)


def select_adaptive_pool2d(x, pool_type='avg', flatten=False,
                           block_budget_bytes=None):
    """Forward pass of SelectAdaptivePool2d (output_size=1) for NCHW input."""
    if pool_type == '':
        # nn.Identity() path (+ optional flatten(1))
        return x.reshape(x.shape[0], -1) if flatten else x
    assert pool_type == 'avg', 'Invalid pool type : %s' % pool_type
    pooled = global_avg_pool2d(x, block_budget_bytes)   # (N, C)
    if flatten:
        return pooled
    return pooled.reshape(x.shape[0], x.shape[1], 1, 1)


# ----------------------------------------------------------------------------
if __name__ == "__main__":
    # small shapes consistent with the module (NCHW input, PyTorch convention)
    batch, channels, height, width = 2, 4, 16, 16
    x = jax.random.normal(jax.random.PRNGKey(0),
                          (batch, channels, height, width), jnp.float32)

    # default config: pool_type='avg', flatten=False -> (N, C, 1, 1)
    out = jax.block_until_ready(
        select_adaptive_pool2d(x, pool_type='avg', flatten=False))
    assert out.shape == (batch, channels, 1, 1), out.shape

    # flatten=True variant (as used right before the classifier) -> (N, C)
    out_flat = jax.block_until_ready(
        select_adaptive_pool2d(x, pool_type='avg', flatten=True))
    assert out_flat.shape == (batch, channels), out_flat.shape

    ref = jnp.mean(x, axis=(2, 3))
    assert bool(jnp.allclose(out_flat, ref, atol=1e-5, rtol=1e-5))
    assert bool(jnp.allclose(out.reshape(batch, channels), ref,
                             atol=1e-5, rtol=1e-5))
    assert bool(jnp.all(jnp.isfinite(out)))

    # identity path
    ident = jax.block_until_ready(
        select_adaptive_pool2d(x, pool_type='', flatten=True))
    assert ident.shape == (batch, channels * height * width), ident.shape

    # H*W with a sub-128 tail (hw=144, EfficientNet-head-like) + multi row blocks
    x_tail = jax.random.normal(jax.random.PRNGKey(0), (2, 64, 12, 12),
                               jnp.float32)
    out_tail = jax.block_until_ready(
        select_adaptive_pool2d(x_tail, pool_type='avg', flatten=True))
    ref_tail = jnp.mean(x_tail, axis=(2, 3))
    assert bool(jnp.allclose(out_tail, ref_tail, atol=1e-4, rtol=1e-4))

    # bf16 activations (f32 accumulation, bf16 output)
    x_bf = x.astype(jnp.bfloat16)
    out_bf = jax.block_until_ready(
        select_adaptive_pool2d(x_bf, pool_type='avg', flatten=True))
    ref_bf = jnp.mean(x_bf.astype(jnp.float32), axis=(2, 3))
    assert bool(jnp.allclose(out_bf.astype(jnp.float32), ref_bf,
                             atol=2e-2, rtol=2e-2))

    # larger shape exercising budget-driven row tiling (multiple row blocks)
    x_big = jax.random.normal(jax.random.PRNGKey(0), (2, 512, 32, 32),
                              jnp.float32)
    out_big = jax.block_until_ready(
        select_adaptive_pool2d(x_big, pool_type='avg', flatten=True))
    ref_big = jnp.mean(x_big, axis=(2, 3))
    assert out_big.shape == (2, 512), out_big.shape
    assert bool(jnp.allclose(out_big, ref_big, atol=1e-4, rtol=1e-4))

    # force the tiled-H*W path with a ragged (masked) tail via a tiny budget
    x_rag = jax.random.normal(jax.random.PRNGKey(0), (2, 4, 47, 48),
                              jnp.float32)
    out_rag = jax.block_until_ready(
        select_adaptive_pool2d(x_rag, pool_type='avg', flatten=True,
                               block_budget_bytes=64 * 1024))
    ref_rag = jnp.mean(x_rag, axis=(2, 3))
    assert bool(jnp.allclose(out_rag, ref_rag, atol=1e-4, rtol=1e-4))

    print("KERNEL_OK")
</pallas_src>

<mosaic_0001>
module attributes {stable_mosaic.version = 11 : i64} {
  func.func @_gap_kernel(%arg0: i32, %arg1: i32, %arg2: memref<8x256xf32, #tpu.memory_space<vmem>>, %arg3: memref<8x1xf32, #tpu.memory_space<vmem>>, %arg4: memref<8x128xf32, #tpu.memory_space<vmem>>) attributes {dimension_semantics = [#tpu.dimension_semantics<parallel>, #tpu.dimension_semantics<arbitrary>], iteration_bounds = array<i64: 1, 1>, scalar_prefetch = 0 : i64, scratch_operands = 1 : i64, tpu.core_type = #tpu.core_type<tc>, window_params = [{transform_indices = @transform_0, window_bounds = array<i64: 8, 256>}, {transform_indices = @transform_1, window_bounds = array<i64: 8, 1>}]} {
    %c0_i32 = arith.constant 0 : i32
    %0 = arith.cmpi eq, %arg1, %c0_i32 : i32
    %1 = arith.extui %0 : i1 to i32
    %c0_i32_0 = arith.constant 0 : i32
    %2 = arith.cmpi ne, %1, %c0_i32_0 : i32
    scf.if %2 {
      %cst = arith.constant 0.000000e+00 : f32
      %14 = vector.broadcast %cst : f32 to vector<8x128xf32>
      %c0_13 = arith.constant 0 : index
      %c0_14 = arith.constant 0 : index
      %15 = vector.load %arg4[%c0_13, %c0_14] : memref<8x128xf32, #tpu.memory_space<vmem>>, vector<8x128xf32>
      tpu.vector_store %arg4[%c0_13, %c0_14], %14 {strides = array<i32>} : memref<8x128xf32, #tpu.memory_space<vmem>>, vector<8x128xf32>,
    } else {
    }
    %c0 = arith.constant 0 : index
    %c0_1 = arith.constant 0 : index
    %3 = vector.load %arg2[%c0, %c0_1] : memref<8x256xf32, #tpu.memory_space<vmem>>, vector<8x128xf32>
    %c0_2 = arith.constant 0 : index
    %c0_3 = arith.constant 0 : index
    %4 = vector.load %arg4[%c0_2, %c0_3] : memref<8x128xf32, #tpu.memory_space<vmem>>, vector<8x128xf32>
    %5 = arith.addf %4, %3 : vector<8x128xf32>
    %c0_4 = arith.constant 0 : index
    %c0_5 = arith.constant 0 : index
    %6 = vector.load %arg4[%c0_4, %c0_5] : memref<8x128xf32, #tpu.memory_space<vmem>>, vector<8x128xf32>
    tpu.vector_store %arg4[%c0_4, %c0_5], %5 {strides = array<i32>} : memref<8x128xf32, #tpu.memory_space<vmem>>, vector<8x128xf32>,
    %c0_6 = arith.constant 0 : index
    %c128 = arith.constant 128 : index
    %7 = vector.load %arg2[%c0_6, %c128] : memref<8x256xf32, #tpu.memory_space<vmem>>, vector<8x128xf32>
    %c0_7 = arith.constant 0 : index
    %c0_8 = arith.constant 0 : index
    %8 = vector.load %arg4[%c0_7, %c0_8] : memref<8x128xf32, #tpu.memory_space<vmem>>, vector<8x128xf32>
    %9 = arith.addf %8, %7 : vector<8x128xf32>
    %c0_9 = arith.constant 0 : index
    %c0_10 = arith.constant 0 : index
    %10 = vector.load %arg4[%c0_9, %c0_10] : memref<8x128xf32, #tpu.memory_space<vmem>>, vector<8x128xf32>
    tpu.vector_store %arg4[%c0_9, %c0_10], %9 {strides = array<i32>} : memref<8x128xf32, #tpu.memory_space<vmem>>, vector<8x128xf32>,
    %c0_i32_11 = arith.constant 0 : i32
    %11 = arith.cmpi eq, %arg1, %c0_i32_11 : i32
    %12 = arith.extui %11 : i1 to i32
    %c0_i32_12 = arith.constant 0 : i32
    %13 = arith.cmpi ne, %12, %c0_i32_12 : i32
    scf.if %13 {
      %c0_13 = arith.constant 0 : index
      %c0_14 = arith.constant 0 : index
      %14 = vector.load %arg4[%c0_13, %c0_14] : memref<8x128xf32, #tpu.memory_space<vmem>>, vector<8x128xf32>
      %cst = arith.constant dense<0.000000e+00> : vector<8xf32>
      %15 = vector.multi_reduction <add>, %14, %cst [1] : vector<8x128xf32> to vector<8xf32>
      %16 = vector.shape_cast %15 : vector<8xf32> to vector<8x1xf32>
      %cst_15 = arith.constant 3.906250e-03 : f32
      %17 = vector.broadcast %cst_15 : f32 to vector<8x1xf32>
      %18 = arith.mulf %16, %17 : vector<8x1xf32>
      %c0_16 = arith.constant 0 : index
      %c0_17 = arith.constant 0 : index
      %19 = vector.load %arg3[%c0_16, %c0_17] : memref<8x1xf32, #tpu.memory_space<vmem>>, vector<8x1xf32>
      tpu.vector_store %arg3[%c0_16, %c0_17], %18 {strides = array<i32>} : memref<8x1xf32, #tpu.memory_space<vmem>>, vector<8x1xf32>,
    } else {
    }
    return
  }
  func.func @transform_0(%arg0: i32, %arg1: i32) -> (i32, i32) {
    %c0_i32 = arith.constant 0 : i32
    return %arg0, %arg1 : i32, i32
  }
  func.func @transform_1(%arg0: i32, %arg1: i32) -> (i32, i32) {
    %c0_i32 = arith.constant 0 : i32
    %c0_i32_0 = arith.constant 0 : i32
    return %arg0, %c0_i32 : i32, i32
  }
}

</mosaic_0001>

<bundles_post_ra>
// kernel: tpu_custom_call.1
= control target key start
LH: loop header
LB: loop body
LE: loop exit
PB: predicated region body
PF: predicated region fallthrough
CT: control target
= control target key end

     0   :  { %6 = vsyncpa [#allocation4], 0  ;;  %s70_s6 = smov [#allocation3]   ;;  %s87_s0 = inlined_call_operand.hbm [shape: f32[8,256], index: 0, kind: input, shape index: {}]   ;;  %s88_s1 = inlined_call_operand.vmem [shape: f32[8,1], index: 1, kind: output, shape index: {}]  }
   0x1   :  { %s13_s7 = sshll.u32 %s70_s6, 4  ;;  %s14_s7 = int_to_ptr.vmem [resolvable:$true] %s13_s7 }
   0x2   :  { %s56_s8 = scalar_lea.vmem %s14_s7, 256  ;;  %p61_p1 = scmp.lt.s32.totalorder %s14_s7, %s14_s7 }
   0x3   :  { %p57_p0 = scmp.ne.s32.totalorder %s14_s7, %s56_s8  ;;  %p62_p2 = scmp.lt.s32.totalorder %s56_s8, %s56_s8 }
   0x5   :  { %p63_p3 = por %p62_p2, %p61_p1 }
   0x7   :  { %p64_p4 = pnand %p63_p3, %p57_p0 }
   0x9   :  { %67 = shalt.err (!%p64_p4)
}
   0xa   :  { %16 = dma.hbm_to_vmem [thread:$0]  %s87_s0, 256, %s14_s7, [#allocation4]  }
   0xb   :  { %68 = dma.done.wait [#allocation4], 256  }
   0xc   :  { %69 = vsyncadd [#allocation4], 4294967040  ;;  %v25_v0 = vld [vmem:[#allocation3] sm:$0xff]  ;;  %v29_v1 = vld [vmem:[#allocation3 + $0x8] sm:$0xff]  ;;  %vm40_vm0 = vcmask 7168  }
   0xd   :  { %v31_v2 = vadd.f32 %v29_v1, %v25_v0 }
   0xf   :  { %37 = vadd.xlane.f32.xlu0 %v31_v2 }
  0x98   :  { %v38_v3 = vpop.xlane.xlu0 %37 }
  0x99   :  { %v39_v4 = vmul.f32 0.00390625, %v38_v3 }
  0x9b   :  { %41 = vst.msk [vmem:[%s88_s1] sm:$0xff] %vm40_vm0, %v39_v4 }
  0x9c   :  { %46 = vsyncpa [#allocation4], 1 }

</bundles_post_ra>
